<compile_context>
chip_gen: v6e
topology: v6e:2x2x1
jax: 0.10.0
libtpu: 0.0.40
codegen_flags: <defaults>
</compile_context>

<pallas_src>
import jax
import jax.numpy as jnp
from jax import lax
from jax.experimental import pallas as pl
from jax.experimental.pallas import tpu as pltpu

EPS = 1e-5
LANES = 128


def _gate_cnn2_kernel(lhs_ref, w0_ref, pool_ref, consts_ref, w1_ref, wl_ref,
                      out_ref):
    # lhs_ref: [B_TILE*HW, KP] bf16 im2col patches for B_TILE samples.
    lhs = lhs_ref[...]

    # conv0 (3x3 "same") as one lane-dense MXU matmul; folded BN + bias; ReLU.
    y = jnp.dot(lhs, w0_ref[...], preferred_element_type=jnp.float32)
    s0 = consts_ref[0:1, :]
    t0 = consts_ref[1:2, :]
    y = jnp.maximum(y * s0 + t0, 0.0)                      # [B*HW, 128] f32

    # Global average pool: block-diagonal [B_TILE, B_TILE*HW] matrix with
    # 1/(H*W) baked in, on the otherwise idle MXU; then folded BN0 + ReLU.
    p = jnp.dot(pool_ref[...], y, preferred_element_type=jnp.float32)
    s1 = consts_ref[2:3, :]
    t1 = consts_ref[3:4, :]
    p = jnp.maximum(p * s1 + t1, 0.0)                      # [B_TILE, 128]

    # conv1 (1x1) == matmul 128 -> 64 (zero-padded to 128 lanes);
    # folded BN1 + bias; ReLU.  Padding lanes have scale=shift=0 -> stay 0.
    h = jnp.dot(p, w1_ref[...], preferred_element_type=jnp.float32)
    s2 = consts_ref[4:5, :]
    t2 = consts_ref[5:6, :]
    h = jnp.maximum(h * s2 + t2, 0.0)                      # [B_TILE, 128]

    # Final Linear (no bias). Output lanes padded to 128; sliced in wrapper.
    out_ref[0] = jnp.dot(h, wl_ref[...], preferred_element_type=jnp.float32)


def gate_cnn2_forward(x_nchw, params, b_tile=None):
    N, Cin, H, W = x_nchw.shape
    HW = H * W
    out_size = params["linear_w"].shape[0]
    K = 9 * Cin
    KP = 64 if K <= 64 else pl.cdiv(K, LANES) * LANES      # lane padding for K
    OUT_PAD = pl.cdiv(out_size, LANES) * LANES

    if b_tile is None:
        # Amortize per-step overhead, but keep >=2 grid steps when possible
        # (v7x has two TensorCores); cap tile so VMEM stays well under the
        # 16/32 MiB default scoped limits on v5e/v7x.
        b_tile = max(1, min(16, N // 2)) if N > 1 else 1
    n_steps = pl.cdiv(N, b_tile)
    n_pad = n_steps * b_tile

    # ---- wrapper-side im2col (layout work stays in XLA, not the kernel) ----
    x = jnp.transpose(x_nchw, (0, 2, 3, 1)).astype(jnp.float32)     # NHWC
    xp = jnp.pad(x, ((0, 0), (1, 1), (1, 1), (0, 0)))
    patches = jnp.concatenate(
        [xp[:, kh:kh + H, kw:kw + W, :] for kh in range(3) for kw in range(3)],
        axis=-1)                                                    # [N,H,W,9*Cin]
    lhs = patches.reshape(N, HW, K)
    lhs = jnp.pad(lhs, ((0, n_pad - N), (0, 0), (0, KP - K)))
    lhs = lhs.reshape(n_pad * HW, KP).astype(jnp.bfloat16)          # bf16 lhs

    # conv0 weight [128, Cin, 3, 3] -> [(kh,kw,Cin), 128], padded to KP, bf16.
    w0 = jnp.transpose(params["conv0_w"], (2, 3, 1, 0)).reshape(K, 128)
    w0 = jnp.pad(w0, ((0, KP - K), (0, 0))).astype(jnp.bfloat16)

    # BatchNorms folded into scale/shift (conv biases folded into the shifts).
    s0 = params["bn_g"] / jnp.sqrt(params["bn_v"] + EPS)
    t0 = (params["conv0_b"] - params["bn_m"]) * s0 + params["bn_b"]
    s1 = params["bn0_g"] / jnp.sqrt(params["bn0_v"] + EPS)
    t1 = params["bn0_b"] - params["bn0_m"] * s1
    s2 = params["bn1_g"] / jnp.sqrt(params["bn1_v"] + EPS)
    t2 = (params["conv1_b"] - params["bn1_m"]) * s2 + params["bn1_b"]
    # Pack the six per-channel vectors into one (8, 128) constant array.
    zero128 = jnp.zeros((128,), jnp.float32)
    consts = jnp.stack([
        s0, t0, s1, t1,
        jnp.pad(s2, (0, 128 - 64)), jnp.pad(t2, (0, 128 - 64)),
        zero128, zero128]).astype(jnp.float32)                      # [8, 128]

    # conv1 1x1 weight -> [128, 64] padded to [128, 128]; linear -> [128, OUT_PAD].
    w1 = jnp.transpose(params["conv1_w"][:, :, 0, 0], (1, 0))       # [128, 64]
    w1 = jnp.pad(w1, ((0, 0), (0, 128 - 64)))
    wl = jnp.transpose(params["linear_w"], (1, 0))                  # [64, out]
    wl = jnp.pad(wl, ((0, 128 - 64), (0, OUT_PAD - out_size)))      # [128, OUT_PAD]

    # Block-diagonal average-pool matrix: row b has 1/HW over cols b*HW:(b+1)*HW.
    pool_mat = jnp.repeat(jnp.eye(b_tile, dtype=jnp.float32), HW,
                          axis=1) * (1.0 / HW)                      # [B, B*HW]

    out = pl.pallas_call(
        _gate_cnn2_kernel,
        grid=(n_steps,),
        in_specs=[
            pl.BlockSpec((b_tile * HW, KP), lambda i: (i, 0)),
            pl.BlockSpec((KP, 128), lambda i: (0, 0)),
            pl.BlockSpec((b_tile, b_tile * HW), lambda i: (0, 0)),
            pl.BlockSpec((8, 128), lambda i: (0, 0)),
            pl.BlockSpec((128, 128), lambda i: (0, 0)),
            pl.BlockSpec((128, OUT_PAD), lambda i: (0, 0)),
        ],
        out_specs=pl.BlockSpec((1, b_tile, OUT_PAD), lambda i: (i, 0, 0)),
        out_shape=jax.ShapeDtypeStruct((n_steps, b_tile, OUT_PAD), jnp.float32),
        compiler_params=pltpu.CompilerParams(
            dimension_semantics=("parallel",)),
    )(lhs, w0, pool_mat, consts, w1, wl)
    return out.reshape(n_pad, OUT_PAD)[:N, :out_size]


def gate_cnn2_reference(x_nchw, params):
    """Pure-JAX reference matching the PyTorch forward (eval-mode BN)."""
    def bn(z, g, b, m, v):
        return ((z - m[None, :, None, None])
                / jnp.sqrt(v[None, :, None, None] + EPS)
                * g[None, :, None, None] + b[None, :, None, None])

    x = x_nchw.astype(jnp.float32)
    y = lax.conv_general_dilated(
        x, params["conv0_w"], (1, 1), ((1, 1), (1, 1)),
        dimension_numbers=("NCHW", "OIHW", "NCHW"),
        precision=lax.Precision.HIGHEST)
    y = y + params["conv0_b"][None, :, None, None]
    y = jax.nn.relu(bn(y, params["bn_g"], params["bn_b"],
                       params["bn_m"], params["bn_v"]))
    y = jnp.mean(y, axis=(2, 3), keepdims=True)
    y = jax.nn.relu(bn(y, params["bn0_g"], params["bn0_b"],
                       params["bn0_m"], params["bn0_v"]))
    y = lax.conv_general_dilated(
        y, params["conv1_w"], (1, 1), ((0, 0), (0, 0)),
        dimension_numbers=("NCHW", "OIHW", "NCHW"),
        precision=lax.Precision.HIGHEST)
    y = y + params["conv1_b"][None, :, None, None]
    y = jax.nn.relu(bn(y, params["bn1_g"], params["bn1_b"],
                       params["bn1_m"], params["bn1_v"]))
    y = y.reshape(y.shape[0], -1)
    return jnp.dot(y, params["linear_w"].T, precision=lax.Precision.HIGHEST)


def init_params(key, input_size, output_size):
    ks = jax.random.split(key, 16)
    n = lambda k, shape, s=0.1: s * jax.random.normal(k, shape, jnp.float32)
    params = {
        "conv0_w": n(ks[0], (128, input_size, 3, 3)),
        "conv0_b": n(ks[1], (128,)),
        "bn_g": 1.0 + n(ks[2], (128,)),
        "bn_b": n(ks[3], (128,)),
        "bn_m": n(ks[4], (128,)),
        "bn_v": 0.5 + jnp.abs(n(ks[5], (128,), 0.5)),
        "bn0_g": 1.0 + n(ks[6], (128,)),
        "bn0_b": n(ks[7], (128,)),
        "bn0_m": n(ks[8], (128,)),
        "bn0_v": 0.5 + jnp.abs(n(ks[9], (128,), 0.5)),
        "conv1_w": n(ks[10], (64, 128, 1, 1)),
        "conv1_b": n(ks[11], (64,)),
        "bn1_g": 1.0 + n(ks[12], (64,)),
        "bn1_b": n(ks[13], (64,)),
        "bn1_m": n(ks[14], (64,)),
        "bn1_v": 0.5 + jnp.abs(n(ks[15], (64,), 0.5)),
        "linear_w": 0.1 * jax.random.normal(
            jax.random.fold_in(key, 99), (output_size, 64), jnp.float32),
    }
    return params


if __name__ == "__main__":
    # GateCNN2(input_size=4, width=16, height=16, output_size=10), batch=2
    N, Cin, H, W, OUT = 2, 4, 16, 16, 10
    key = jax.random.PRNGKey(0)
    kx, kp = jax.random.split(key)
    x = jax.random.normal(kx, (N, Cin, H, W), jnp.float32)   # PyTorch NCHW
    params = init_params(kp, Cin, OUT)

    out = jax.block_until_ready(gate_cnn2_forward(x, params))
    ref = jax.block_until_ready(gate_cnn2_reference(x, params))

    assert out.shape == (N, OUT), out.shape
    max_err = jnp.max(jnp.abs(out - ref))
    # Tolerance accounts for bf16-operand MXU matmuls vs the HIGHEST-precision
    # f32 reference.
    assert jnp.allclose(out, ref, atol=2e-2, rtol=2e-2), (
        f"max abs err {max_err}")
    print("KERNEL_OK")
</pallas_src>

<mosaic_0001>
module attributes {stable_mosaic.version = 11 : i64} {
  func.func @_gate_cnn2_kernel(%arg0: i32, %arg1: memref<256x64xbf16, #tpu.memory_space<vmem>>, %arg2: memref<64x128xbf16, #tpu.memory_space<vmem>>, %arg3: memref<1x256xf32, #tpu.memory_space<vmem>>, %arg4: memref<8x128xf32, #tpu.memory_space<vmem>>, %arg5: memref<128x128xf32, #tpu.memory_space<vmem>>, %arg6: memref<128x128xf32, #tpu.memory_space<vmem>>, %arg7: memref<1x1x128xf32, #tpu.memory_space<vmem>>) attributes {dimension_semantics = [#tpu.dimension_semantics<parallel>], iteration_bounds = array<i64: 2>, scalar_prefetch = 0 : i64, scratch_operands = 0 : i64, tpu.core_type = #tpu.core_type<tc>, window_params = [{transform_indices = @transform_0, window_bounds = array<i64: 256, 64>}, {pipeline_mode = #tpu.pipeline_mode<synchronous>, transform_indices = @transform_1, window_bounds = array<i64: 64, 128>}, {pipeline_mode = #tpu.pipeline_mode<synchronous>, transform_indices = @transform_2, window_bounds = array<i64: 1, 256>}, {pipeline_mode = #tpu.pipeline_mode<synchronous>, transform_indices = @transform_3, window_bounds = array<i64: 8, 128>}, {pipeline_mode = #tpu.pipeline_mode<synchronous>, transform_indices = @transform_4, window_bounds = array<i64: 128, 128>}, {pipeline_mode = #tpu.pipeline_mode<synchronous>, transform_indices = @transform_5, window_bounds = array<i64: 128, 128>}, {transform_indices = @transform_6, window_bounds = array<i64: 1, 1, 128>}]} {
    %c0 = arith.constant 0 : index
    %c0_0 = arith.constant 0 : index
    %0 = vector.load %arg1[%c0, %c0_0] : memref<256x64xbf16, #tpu.memory_space<vmem>>, vector<256x64xbf16>
    %c0_1 = arith.constant 0 : index
    %c0_2 = arith.constant 0 : index
    %1 = vector.load %arg2[%c0_1, %c0_2] : memref<64x128xbf16, #tpu.memory_space<vmem>>, vector<64x128xbf16>
    %cst = arith.constant dense<0.000000e+00> : vector<256x128xf32>
    %2 = tpu.matmul %0, %1, %cst {dimension_numbers = #tpu.dot_dimension_numbers<[1], [0], [0], [1], [0, 0, 1, 1], [], []>} : vector<256x64xbf16>, vector<64x128xbf16>, vector<256x128xf32> -> vector<256x128xf32>
    %c0_3 = arith.constant 0 : index
    %c0_4 = arith.constant 0 : index
    %3 = vector.load %arg4[%c0_3, %c0_4] : memref<8x128xf32, #tpu.memory_space<vmem>>, vector<1x128xf32>
    %c1 = arith.constant 1 : index
    %c0_5 = arith.constant 0 : index
    %4 = vector.load %arg4[%c1, %c0_5] : memref<8x128xf32, #tpu.memory_space<vmem>>, vector<1x128xf32>
    %5 = vector.broadcast %3 : vector<1x128xf32> to vector<256x128xf32>
    %6 = arith.mulf %2, %5 : vector<256x128xf32>
    %7 = vector.broadcast %4 : vector<1x128xf32> to vector<256x128xf32>
    %8 = arith.addf %6, %7 : vector<256x128xf32>
    %cst_6 = arith.constant 0.000000e+00 : f32
    %9 = vector.broadcast %cst_6 : f32 to vector<256x128xf32>
    %10 = arith.maximumf %8, %9 : vector<256x128xf32>
    %c0_7 = arith.constant 0 : index
    %c0_8 = arith.constant 0 : index
    %11 = vector.load %arg3[%c0_7, %c0_8] : memref<1x256xf32, #tpu.memory_space<vmem>>, vector<1x256xf32>
    %cst_9 = arith.constant dense<0.000000e+00> : vector<1x128xf32>
    %12 = tpu.matmul %11, %10, %cst_9 {dimension_numbers = #tpu.dot_dimension_numbers<[1], [0], [0], [1], [0, 0, 1, 1], [], []>} : vector<1x256xf32>, vector<256x128xf32>, vector<1x128xf32> -> vector<1x128xf32>
    %c2 = arith.constant 2 : index
    %c0_10 = arith.constant 0 : index
    %13 = vector.load %arg4[%c2, %c0_10] : memref<8x128xf32, #tpu.memory_space<vmem>>, vector<1x128xf32>
    %c3 = arith.constant 3 : index
    %c0_11 = arith.constant 0 : index
    %14 = vector.load %arg4[%c3, %c0_11] : memref<8x128xf32, #tpu.memory_space<vmem>>, vector<1x128xf32>
    %15 = arith.mulf %12, %13 : vector<1x128xf32>
    %16 = arith.addf %15, %14 : vector<1x128xf32>
    %cst_12 = arith.constant 0.000000e+00 : f32
    %17 = vector.broadcast %cst_12 : f32 to vector<1x128xf32>
    %18 = arith.maximumf %16, %17 : vector<1x128xf32>
    %c0_13 = arith.constant 0 : index
    %c0_14 = arith.constant 0 : index
    %19 = vector.load %arg5[%c0_13, %c0_14] : memref<128x128xf32, #tpu.memory_space<vmem>>, vector<128x128xf32>
    %cst_15 = arith.constant dense<0.000000e+00> : vector<1x128xf32>
    %20 = tpu.matmul %18, %19, %cst_15 {dimension_numbers = #tpu.dot_dimension_numbers<[1], [0], [0], [1], [0, 0, 1, 1], [], []>} : vector<1x128xf32>, vector<128x128xf32>, vector<1x128xf32> -> vector<1x128xf32>
    %c4 = arith.constant 4 : index
    %c0_16 = arith.constant 0 : index
    %21 = vector.load %arg4[%c4, %c0_16] : memref<8x128xf32, #tpu.memory_space<vmem>>, vector<1x128xf32>
    %c5 = arith.constant 5 : index
    %c0_17 = arith.constant 0 : index
    %22 = vector.load %arg4[%c5, %c0_17] : memref<8x128xf32, #tpu.memory_space<vmem>>, vector<1x128xf32>
    %23 = arith.mulf %20, %21 : vector<1x128xf32>
    %24 = arith.addf %23, %22 : vector<1x128xf32>
    %cst_18 = arith.constant 0.000000e+00 : f32
    %25 = vector.broadcast %cst_18 : f32 to vector<1x128xf32>
    %26 = arith.maximumf %24, %25 : vector<1x128xf32>
    %c0_19 = arith.constant 0 : index
    %c0_20 = arith.constant 0 : index
    %27 = vector.load %arg6[%c0_19, %c0_20] : memref<128x128xf32, #tpu.memory_space<vmem>>, vector<128x128xf32>
    %cst_21 = arith.constant dense<0.000000e+00> : vector<1x128xf32>
    %28 = tpu.matmul %26, %27, %cst_21 {dimension_numbers = #tpu.dot_dimension_numbers<[1], [0], [0], [1], [0, 0, 1, 1], [], []>} : vector<1x128xf32>, vector<128x128xf32>, vector<1x128xf32> -> vector<1x128xf32>
    %c0_22 = arith.constant 0 : index
    %c0_23 = arith.constant 0 : index
    %c0_24 = arith.constant 0 : index
    %29 = vector.load %arg7[%c0_22, %c0_23, %c0_24] : memref<1x1x128xf32, #tpu.memory_space<vmem>>, vector<1x1x128xf32>
    %30 = vector.shape_cast %29 : vector<1x1x128xf32> to vector<1x128xf32>
    %31 = vector.shape_cast %28 : vector<1x128xf32> to vector<1x1x128xf32>
    tpu.vector_store %arg7[%c0_22, %c0_23, %c0_24], %31 {strides = array<i32>} : memref<1x1x128xf32, #tpu.memory_space<vmem>>, vector<1x1x128xf32>,
    return
  }
  func.func @transform_0(%arg0: i32) -> (i32, i32) {
    %c0_i32 = arith.constant 0 : i32
    %c0_i32_0 = arith.constant 0 : i32
    return %arg0, %c0_i32 : i32, i32
  }
  func.func @transform_1(%arg0: i32) -> (i32, i32) {
    %c0_i32 = arith.constant 0 : i32
    %c0_i32_0 = arith.constant 0 : i32
    %c0_i32_1 = arith.constant 0 : i32
    return %c0_i32, %c0_i32_0 : i32, i32
  }
  func.func @transform_2(%arg0: i32) -> (i32, i32) {
    %c0_i32 = arith.constant 0 : i32
    %c0_i32_0 = arith.constant 0 : i32
    %c0_i32_1 = arith.constant 0 : i32
    return %c0_i32, %c0_i32_0 : i32, i32
  }
  func.func @transform_3(%arg0: i32) -> (i32, i32) {
    %c0_i32 = arith.constant 0 : i32
    %c0_i32_0 = arith.constant 0 : i32
    %c0_i32_1 = arith.constant 0 : i32
    return %c0_i32, %c0_i32_0 : i32, i32
  }
  func.func @transform_4(%arg0: i32) -> (i32, i32) {
    %c0_i32 = arith.constant 0 : i32
    %c0_i32_0 = arith.constant 0 : i32
    %c0_i32_1 = arith.constant 0 : i32
    return %c0_i32, %c0_i32_0 : i32, i32
  }
  func.func @transform_5(%arg0: i32) -> (i32, i32) {
    %c0_i32 = arith.constant 0 : i32
    %c0_i32_0 = arith.constant 0 : i32
    %c0_i32_1 = arith.constant 0 : i32
    return %c0_i32, %c0_i32_0 : i32, i32
  }
  func.func @transform_6(%arg0: i32) -> (i32, i32, i32) {
    %c0_i32 = arith.constant 0 : i32
    %c0_i32_0 = arith.constant 0 : i32
    %c0_i32_1 = arith.constant 0 : i32
    return %arg0, %c0_i32, %c0_i32_0 : i32, i32, i32
  }
}

</mosaic_0001>

<bundles_post_ra>
// kernel: tpu_custom_call.1
= control target key start
LH: loop header
LB: loop body
LE: loop exit
PB: predicated region body
PF: predicated region fallthrough
CT: control target
= control target key end

     0   :  { %11 = vsyncpa [#allocation3], 0  ;;  %s1866_s0 = inlined_call_operand.vmem [shape: bf16[512,64], index: 0, kind: input, shape index: {}]   ;;  %s1867_s1 = inlined_call_operand.vmem [shape: bf16[64,128], index: 1, kind: input, shape index: {}]   ;;  %s1868_s2 = inlined_call_operand.vmem [shape: f32[1,256], index: 2, kind: input, shape index: {}]   ;;  %s1869_s3 = inlined_call_operand.vmem [shape: f32[8,128], index: 3, kind: input, shape index: {}]   ;;  %s1870_s4 = inlined_call_operand.vmem [shape: f32[128,128], index: 4, kind: input, shape index: {}]   ;;  %s1871_s5 = inlined_call_operand.vmem [shape: f32[128,128], index: 5, kind: input, shape index: {}]   ;;  %s1872_s6 = inlined_call_operand.hbm [shape: f32[2,1,128], index: 6, kind: output, shape index: {}]  }
   0x1   :  { %13 = vsyncpa [#allocation3 + $0x1], 0  ;;  %s1452_s21 = smov 0   ;;  %s1454_s22 = smov 0  }
   0x2   :  { %s1456_s23 = smov 0   ;;  %s1458_s24 = smov 0  }
   0x3 LB: > { %s1473_s25 = sadd.s32 4294967295, %s1412_s24   ;;  %s1045_s26 = sadd.s32 4294967294, %s1412_s24   ;;  %s1412_s24 = sphi %s1458_s24, %s1878_s24   ;;  %s1408_s23 = sphi %s1456_s23, %s1877_s23   ;;  %s1404_s22 = sphi %s1454_s22, %s1876_s22   ;;  %s1400_s21 = sphi %s1452_s21, %s1875_s21  }
   0x4   : > { %s1477_s27 = sadd.s32 1, %s1412_s24   ;;  %s157_s28 = sadd.s32 1, %s1408_s23 }
   0x5   : > { %s154_s29 = ssub.s32 %s1412_s24, %s1477_s27  ;;  %p167_p0 = scmp.ne.s32.totalorder %s1408_s23, %s1404_s22 }
   0x6   : > { %p155_p1 = scmp.eq.s32.totalorder %s154_s29, 0  ;;  %p168_p2 = scmp.eq.s32.totalorder %s1473_s25, 1 }
   0x7   : > { %p173_p3 = scmp.ne.s32.totalorder %s1404_s22, %s1400_s21  ;;  %p174_p4 = scmp.eq.s32.totalorder %s1045_s26, 1 }
   0x8   : > { %s1488_s30 = scalar_select %p155_p1, %s1408_s23, %s157_s28  }
   0x9   : > { %p1490_p5 = por %p168_p2, %p167_p0  ;;  %p1494_p6 = por %p174_p4, %p173_p3 }
   0xa   : > { %p1048_p7 = scmp.ge.s32.totalorder %s1412_s24, 1  ;;  %p216_p8 = scmp.lt.s32.totalorder %s1412_s24, 3 }
   0xc   : > { %p217_p9 = pnand %p1048_p7, %p216_p8 }
   0xd   : > { %s1049_s11 = sshll.u32 (!%p217_p9), %s1473_s25, 5  ;;  %s243_s10 = sand.u32 (!%p217_p9), 1, %s1404_s22  }
   0xe   : > { %220 = sbr.rel (%p217_p9) target bundleno = 936 (0x3a8), region = 44  ;;  %p246_p10 = scmp.lt.s32.totalorder (!%p217_p9), %s1049_s11, 63 }
   0xf   : > { %s1089_s13 = sshll.u32 (!%p217_p9), %s1473_s25, 4  ;;  %s978_s17 = scalar_lea.sflag (!%p217_p9), [#allocation3], %s243_s10 }
  0x10   : > { %s1416_s25 = smov (!%p217_p9), [#allocation2]  }
  0x13   : > { %v1332_v0 = vld [vmem:[%s1867_s1 + $0x18] sm:$0xff]   ;;  %v1333_v1 = vld [vmem:[%s1867_s1 + $0x10] sm:$0xff]   ;;  %s1880_s11 = smov (!%p246_p10, %s1049_s11), 63  ;;  %v1334_v2 = vld [vmem:[%s1867_s1 + $0x8] sm:$0xff]   ;;  %vm396_vm0 = vcmask 523264   ;;  %v714_v20 = vlaneseq  ;;  %v1414_v27 = vmov 0.0  }
  0x14   : > { %1181 = vmatprep.subr.bf16.mxu0 %v1332_v0  ;;  %s1050_s16 = sshll.u32 %s1880_s11, 2  ;;  %v1335_v4 = vld [vmem:[%s1867_s1] sm:$0xff]   ;;  %vm1415_vm1 = vmmov 0   ;;  %s244_s11 = scalar_lea.vmem [#allocation2], %s243_s10 }
  0x15   : > { %1182 = vmatpush3.bf16.msra.mxu0 %v1332_v0  ;;  %s1513_s19 = scalar_lea.vmem %s1866_s0, %s1050_s16  ;;  %v715_v21 = vshrl.u32 %v714_v20, 7  ;;  %v712_v23 = vld [vmem:[%s1868_s2] sm:$0x3]  ;;  %s990_s12 = sshll.u32 %s244_s11, 4  ;;  %s1822_s12 = int_to_ptr.vmem [resolvable:$true] %s990_s12 }
  0x16   : > { %1183 = vmatprep.subr.bf16.mxu0 %v1333_v1  ;;  %v1336_v3 = vld [vmem:[%s1513_s19] sm:$0xff]   ;;  %v1337_v5 = vld [vmem:[%s1513_s19 + $0x8] sm:$0xff]   ;;  %v1338_v6 = vld [vmem:[%s1513_s19 + $0x10] sm:$0xff]   ;;  %s1827_s16 = scalar_lea.hbm %s1872_s6, %s1089_s13  ;;  %s1352_s18 = scalar_lea.vmem %s1822_s12, 16 }
  0x17   : > { %1189 = vmatprep.mubr.msk.bf16.mxu0 %vm396_vm0, %v1336_v3  ;;  %v1339_v7 = vld [vmem:[%s1513_s19 + $0x18] sm:$0xff]   ;;  %v1340_v8 = vld [vmem:[%s1513_s19 + $0x20] sm:$0xff]   ;;  %v1341_v9 = vld [vmem:[%s1513_s19 + $0x28] sm:$0xff]   ;;  %v720_v22 = vsub.s32 1, %v715_v21  ;;  %v716_v24 = vsub.s32 0, %v715_v21  ;;  %p1353_p11 = scmp.ne.s32.totalorder %s1822_s12, %s1352_s18 }
  0x18   : > { %v1342_v10 = vld [vmem:[%s1513_s19 + $0x30] sm:$0xff]   ;;  %v1343_v11 = vld [vmem:[%s1513_s19 + $0x38] sm:$0xff]   ;;  %v1344_v12 = vld [vmem:[%s1513_s19 + $0x40] sm:$0xff]  }
  0x19   : > { %1184 = vmatpush3.bf16.msra.mxu0 %v1333_v1  ;;  %v1345_v13 = vld [vmem:[%s1513_s19 + $0x48] sm:$0xff]   ;;  %v1346_v14 = vld [vmem:[%s1513_s19 + $0x50] sm:$0xff]   ;;  %v1347_v15 = vld [vmem:[%s1513_s19 + $0x58] sm:$0xff]   ;;  %v721_v25 = vrot.slane %v712_v23, %v720_v22  ;;  %v1553_v26 = vrot.slane %v712_v23, %v716_v24  ;;  %p1354_p12 = pnand %p1353_p11, %p1490_p5 }
  0x1a   : > { %1185 = vmatprep.subr.bf16.mxu0 %v1334_v2  ;;  %v1348_v16 = vld [vmem:[%s1513_s19 + $0x60] sm:$0xff]   ;;  %v1349_v17 = vld [vmem:[%s1513_s19 + $0x68] sm:$0xff]   ;;  %v1350_v18 = vld [vmem:[%s1513_s19 + $0x70] sm:$0xff]  }
  0x1b   : > { %v1351_v19 = vld [vmem:[%s1513_s19 + $0x78] sm:$0xff]   ;;  %788 = vmatprep.mubr.f32.mxu1 %v721_v25  ;;  %v1591_v57 = vld [vmem:[%s1869_s3] ss:$0 sm:$0xff]  ;;  %v1599_v63 = vld [vmem:[%s1869_s3 + $0x1] ss:$0 sm:$0xff]  ;;  %p1355_p13 = pneg %p1354_p12  ;;  %s1356_s19 = sshll.u32 %s1416_s25, 4  ;;  %s1357_s19 = int_to_ptr.vmem [resolvable:$false] %s1356_s19 }
  0x1c   : > { %s1358_s20 = scalar_lea.vmem %s1357_s19, 32  ;;  %p1359_p0 = scmp.lt.s32.totalorder %s1822_s12, %s1357_s19 }
  0x1d   : > { %1186 = vmatpush3.bf16.msra.mxu0 %v1334_v2  ;;  %p1360_p1 = scmp.lt.s32.totalorder %s1358_s20, %s1352_s18 }
  0x1e   : > { %1187 = vmatprep.subr.bf16.mxu0 %v1335_v4 }
  0x1f   : > { %p1361_p2 = por %p1360_p1, %p1359_p0 }
  0x21   : > { %1188 = vmatpush3.bf16.msra.mxu0 %v1335_v4  ;;  %p1362_p3 = pnand %p1361_p2, %p1355_p13 }
  0x22   : > { %1256 = vmatprep.subr.mxu0 %v1414_v27 }
  0x24   : > { %1190 = vmatmul.mubr.msk.bf16.vlgmr.msra.gmra.mxu0 %vm396_vm0, %v1337_v5 }
  0x25   : > { %1193 = vmatprep.mubr.msk.bf16.mxu0 %vm396_vm0, %v1338_v6 }
  0x2c   : > { %1194 = vmatmul.mubr.msk.bf16.gmra.mxu0 %vm396_vm0, %v1339_v7 }
  0x2d   : > { %1197 = vmatprep.mubr.msk.bf16.mxu0 %vm396_vm0, %v1340_v8 }
  0x34   : > { %1198 = vmatmul.mubr.msk.bf16.gmra.mxu0 %vm396_vm0, %v1341_v9 }
  0x35   : > { %1201 = vmatprep.mubr.msk.bf16.mxu0 %vm396_vm0, %v1342_v10 }
  0x3c   : > { %1202 = vmatmul.mubr.msk.bf16.gmra.mxu0 %vm396_vm0, %v1343_v11 }
  0x3d   : > { %1205 = vmatprep.mubr.msk.bf16.mxu0 %vm396_vm0, %v1344_v12 }
  0x44   : > { %1206 = vmatmul.mubr.msk.bf16.gmra.mxu0 %vm396_vm0, %v1345_v13 }
  0x45   : > { %1209 = vmatprep.mubr.msk.bf16.mxu0 %vm396_vm0, %v1346_v14 }
  0x4c   : > { %1210 = vmatmul.mubr.msk.bf16.gmra.mxu0 %vm396_vm0, %v1347_v15 }
  0x4d   : > { %1213 = vmatprep.mubr.msk.bf16.mxu0 %vm396_vm0, %v1348_v16 }
  0x54   : > { %1214 = vmatmul.mubr.msk.bf16.gmra.mxu0 %vm396_vm0, %v1349_v17 }
  0x55   : > { %1217 = vmatprep.mubr.msk.bf16.mxu0 %vm396_vm0, %v1350_v18 }
  0x5c   : > { %1218 = vmatmul.mubr.msk.bf16.gmra.mxu0 %vm396_vm0, %v1351_v19 }
  0x5d   : > { %1288 = vmatprep.mubr.msk.f32.mxu0 %vm1415_vm1, %v1414_v27 }
  0xe4   : > { %v1556_v28 = vpop.f32.mrf.mxu0 }
  0xe6   : > { %v1558_v29 = vpop.f32.mrf.mxu0 }
  0xe8   : > { %v1560_v30 = vpop.f32.mrf.mxu0 }
  0xea   : > { %v1562_v31 = vpop.f32.mrf.mxu0 }
  0xec   : > { %v1564_v32 = vpop.f32.mrf.mxu0 }
  0xee   : > { %v1566_v33 = vpop.f32.mrf.mxu0 }
  0xf0   : > { %v1568_v34 = vpop.f32.mrf.mxu0 }
  0xf2   : > { %v1570_v35 = vpop.f32.mrf.mxu0 }
  0xf4   : > { %v1199_v36 = vpop.f32.mrf.mxu0 }
  0xf5   : > { %v622_v19 = vmul.f32 %v1199_v36, %v1591_v57 }
  0xf6   : > { %v1572_v37 = vpop.f32.mrf.mxu0 }
  0xf8   : > { %v1200_v38 = vpop.f32.mrf.mxu0 }
  0xf9   : > { %v623_v13 = vmul.f32 %v1200_v38, %v1591_v57 }
  0xfa   : > { %v514_v39 = vpop.f32.mrf.mxu0 }
  0xfb   : > { %v659_v25 = vadd.f32 %v1599_v63, %v623_v13  ;;  %v621_v38 = vmul.f32 %v1591_v57, %v514_v39 }
  0xfc   : > { %v1203_v40 = vpop.f32.mrf.mxu0 }
  0xfd   : > { %v626_v61 = vmul.f32 %v1203_v40, %v1591_v57 }
  0xfe   : > { %v527_v41 = vpop.f32.mrf.mxu0 }
  0xff   : > { %v662_v8 = vadd.f32 %v1599_v63, %v626_v61  ;;  %v624_v9 = vmul.f32 %v1591_v57, %v527_v41 }
 0x100   : > { %v1204_v42 = vpop.f32.mrf.mxu0 }
 0x101   : > { %v627_v58 = vmul.f32 %v1204_v42, %v1591_v57  ;;  %v694_v20 = vmax.f32 %v662_v8, 0.0  ;;  %v660_v21 = vadd.f32 %v1599_v63, %v624_v9 }
 0x102   : > { %v530_v43 = vpop.f32.mrf.mxu0 }
 0x103   : > { %v625_v1 = vmul.f32 %v1591_v57, %v530_v43  ;;  %v663_v3 = vadd.f32 %v1599_v63, %v627_v58  ;;  %v658_v43 = vadd.f32 %v1599_v63, %v622_v19  ;;  %v619_v58 = vmul.f32 %v1568_v34, %v1591_v57 }
 0x104   : > { %v1574_v44 = vpop.f32.mrf.mxu0  ;;  %v613_v19 = vmul.f32 %v1591_v57, %v1562_v31 }
 0x105   : > { %v661_v14 = vadd.f32 %v1599_v63, %v625_v1  ;;  %v695_v15 = vmax.f32 %v663_v3, 0.0  ;;  %v617_v3 = vmul.f32 %v1591_v57, %v1570_v35  ;;  %v630_v13 = vmul.f32 %v1574_v44, %v1591_v57 }
 0x106   : > { %v1576_v45 = vpop.f32.mrf.mxu0 }
 0x107   : > { %v693_v40 = vmax.f32 %v661_v14, 0.0 }
 0x108   : > { %v1578_v46 = vpop.f32.mrf.mxu0 }
 0x109   : > { %v631_v9 = vmul.f32 %v1578_v46, %v1591_v57  ;;  %v614_v46 = vmul.f32 %v1556_v28, %v1591_v57  ;;  %v666_v28 = vadd.f32 %v1599_v63, %v630_v13  ;;  %v794_v13 = vld [vmem:[%s1869_s3 + $0x2] sm:$0x1] }
 0x10a   : > { %v1580_v47 = vpop.f32.mrf.mxu0 }
 0x10c   : > { %v1582_v48 = vpop.f32.mrf.mxu0 }
 0x10e   : > { %v1584_v49 = vpop.f32.mrf.mxu0 }
 0x110   : > { %v1212_v50 = vpop.f32.mrf.mxu0 }
 0x112   : > { %v1586_v51 = vpop.f32.mrf.mxu0 }
 0x113   : > { %v633_v1 = vmul.f32 %v1591_v57, %v1586_v51  ;;  %v616_v51 = vmul.f32 %v1591_v57, %v1566_v33 }
 0x114   : > { %v1215_v52 = vpop.f32.mrf.mxu0 }
 0x115   : > { %v638_v16 = vmul.f32 %v1215_v52, %v1591_v57  ;;  %v620_v52 = vmul.f32 %v1591_v57, %v1572_v37 }
 0x116   : > { %v575_v53 = vpop.f32.mrf.mxu0 }
 0x117   : > { %v674_v41 = vadd.f32 %v1599_v63, %v638_v16  ;;  %v636_v36 = vmul.f32 %v1591_v57, %v575_v53  ;;  %v657_v53 = vadd.f32 %v1599_v63, %v621_v38  ;;  %v652_v16 = vadd.f32 %v1599_v63, %v616_v51  ;;  %v896_v51 = vld [vmem:[%s1871_s5 + $0x30] sm:$0xff] }
 0x118   : > { %v1216_v54 = vpop.f32.mrf.mxu0 }
 0x119   : > { %v639_v10 = vmul.f32 %v1216_v54, %v1591_v57  ;;  %v692_v54 = vmax.f32 %v660_v21, 0.0  ;;  %v706_v61 = vmax.f32 %v674_v41, 0.0  ;;  %v672_v37 = vadd.f32 %v1599_v63, %v636_v36 }
 0x11a   : > { %v578_v55 = vpop.f32.mrf.mxu0  ;;  %v628_v21 = vmul.f32 %v1591_v57, %v1576_v45  ;;  %v698_v41 = vmax.f32 %v666_v28, 0.0 }
 0x11b   : > { %v675_v22 = vadd.f32 %v1599_v63, %v639_v10  ;;  %v637_v23 = vmul.f32 %v1591_v57, %v578_v55  ;;  %v635_v55 = vmul.f32 %v1212_v50, %v1591_v57  ;;  %v618_v50 = vmul.f32 %v1564_v32, %v1591_v57 }
 0x11c   : > { %v1219_v56 = vpop.f32.mrf.mxu0  ;;  %v669_v10 = vadd.f32 %v1599_v63, %v633_v1  ;;  %v664_v45 = vadd.f32 %v1599_v63, %v628_v21  ;;  %v905_v1 = vld [vmem:[%s1871_s5 + $0x78] sm:$0xff] }
 0x11d   : > { %v642_v60 = vmul.f32 %v1219_v56, %v1591_v57  ;;  %v707_v56 = vmax.f32 %v675_v22, 0.0  ;;  %v673_v39 = vadd.f32 %v1599_v63, %v637_v23  ;;  %v671_v34 = vadd.f32 %v1599_v63, %v635_v55  ;;  %v812_v55 = vld [vmem:[%s1870_s4 + $0x68] sm:$0xff]  ;;  %1257 = vmatpush3.msra.mxu0 %v905_v1 }
 0x11e   : > { %v591_v59 = vpop.f32.mrf.mxu0  ;;  %v650_v23 = vadd.f32 %v1599_v63, %v614_v46  ;;  %1258 = vmatprep.subr.mxu0 %v1414_v27 }
 0x11f   : > { %v678_v4 = vadd.f32 %v1599_v63, %v642_v60  ;;  %v640_v5 = vmul.f32 %v1591_v57, %v591_v59  ;;  %v691_v59 = vmax.f32 %v659_v25, 0.0  ;;  %v634_v60 = vmul.f32 %v1582_v48, %v1591_v57 }
 0x120   : > { %v1220_v62 = vpop.f32.mrf.mxu0  ;;  %v655_v48 = vadd.f32 %v1599_v63, %v619_v58  ;;  %v703_v35 = vmax.f32 %v671_v34, 0.0  ;;  %v682_v36 = vmax.f32 %v650_v23, 0.0  ;;  %v808_v58 = vld [vmem:[%s1870_s4 + $0x48] sm:$0xff]  ;;  %v799_v34 = vld [vmem:[%s1870_s4] sm:$0xff] }
 0x121   : > { %v643_v0 = vmul.f32 %v1220_v62, %v1591_v57  ;;  %v710_v17 = vmax.f32 %v678_v4, 0.0  ;;  %v676_v18 = vadd.f32 %v1599_v63, %v640_v5  ;;  %v690_v62 = vmax.f32 %v658_v43, 0.0 }
 0x122   : > { %v594_v2 = vpop.f32.mrf.mxu0  ;;  %v689_v4 = vmax.f32 %v657_v53, 0.0  ;;  %v670_v32 = vadd.f32 %v1599_v63, %v634_v60  ;;  %v632_v5 = vmul.f32 %v1591_v57, %v1584_v49  ;;  %v687_v49 = vmax.f32 %v655_v48, 0.0  ;;  %v806_v53 = vld [vmem:[%s1870_s4 + $0x38] sm:$0xff]  ;;  %v805_v60 = vld [vmem:[%s1870_s4 + $0x30] sm:$0xff]  ;;  %v903_v48 = vld [vmem:[%s1871_s5 + $0x68] sm:$0xff] }
 0x123   : > { %v641_v6 = vmul.f32 %v1591_v57, %v594_v2  ;;  %v679_v7 = vadd.f32 %v1599_v63, %v643_v0  ;;  %v708_v42 = vmax.f32 %v676_v18, 0.0  ;;  %v656_v0 = vadd.f32 %v1599_v63, %v620_v52 }
 0x124   : > { %v705_v2 = vmax.f32 %v673_v39, 0.0  ;;  %v702_v33 = vmax.f32 %v670_v32, 0.0  ;;  %v668_v14 = vadd.f32 %v1599_v63, %v632_v5  ;;  %v701_v18 = vmax.f32 %v669_v10, 0.0  ;;  %v809_v39 = vld [vmem:[%s1870_s4 + $0x50] sm:$0xff]  ;;  %v899_v5 = vld [vmem:[%s1871_s5 + $0x48] sm:$0xff] }
 0x125   : > { %v677_v11 = vadd.f32 %v1599_v63, %v641_v6  ;;  %v711_v12 = vmax.f32 %v679_v7, 0.0  ;;  %v704_v6 = vmax.f32 %v672_v37, 0.0  ;;  %v654_v7 = vadd.f32 %v1599_v63, %v618_v50  ;;  %v803_v37 = vld [vmem:[%s1870_s4 + $0x20] sm:$0xff]  ;;  %v802_v50 = vld [vmem:[%s1870_s4 + $0x18] sm:$0xff]  ;;  %v900_v32 = vld [vmem:[%s1871_s5 + $0x50] sm:$0xff] }
 0x126   : > { %v688_v8 = vmax.f32 %v656_v0, 0.0  ;;  %v700_v22 = vmax.f32 %v668_v14, 0.0  ;;  %v800_v0 = vld [vmem:[%s1870_s4 + $0x8] sm:$0xff]  ;;  %v892_v10 = vld [vmem:[%s1871_s5 + $0x10] sm:$0xff]  ;;  %v795_v14 = vld [vmem:[%s1869_s3 + $0x3] sm:$0x1] }
 0x127   : > { %1112 = vmatprep.subr.mxu1 %v711_v12  ;;  %v709_v24 = vmax.f32 %v677_v11, 0.0  ;;  %v615_v11 = vmul.f32 %v1560_v30, %v1591_v57  ;;  %v653_v12 = vadd.f32 %v1599_v63, %v617_v3  ;;  %v667_v30 = vadd.f32 %v1599_v63, %v631_v9  ;;  %v902_v3 = vld [vmem:[%s1871_s5 + $0x60] sm:$0xff] }
 0x128   : > { %1113 = vmatpush3.msra.mxu1 %v695_v15  ;;  %v686_v15 = vmax.f32 %v654_v7, 0.0  ;;  %v897_v7 = vld [vmem:[%s1871_s5 + $0x38] sm:$0xff]  ;;  %v894_v9 = vld [vmem:[%s1871_s5 + $0x20] sm:$0xff] }
 0x129   : > { %1114 = vmatprep.subr.mxu1 %v710_v17  ;;  %v629_v17 = vmul.f32 %v1591_v57, %v1580_v47  ;;  %v651_v44 = vadd.f32 %v1599_v63, %v615_v11  ;;  %v612_v47 = vmul.f32 %v1591_v57, %v1558_v29  ;;  %v699_v25 = vmax.f32 %v667_v30, 0.0  ;;  %v891_v11 = vld [vmem:[%s1871_s5 + $0x8] sm:$0xff]  ;;  %v885_v30 = vld [vmem:[%s1869_s3 + $0x4] sm:$0x1] }
 0x12a   : > { %1115 = vmatpush3.msra.mxu1 %v694_v20  ;;  %v685_v20 = vmax.f32 %v653_v12, 0.0  ;;  %v696_v57 = vmax.f32 %v664_v45, 0.0 }
 0x12b   : > { %1116 = vmatprep.subr.mxu1 %v709_v24  ;;  %v684_v24 = vmax.f32 %v652_v16, 0.0  ;;  %v665_v38 = vadd.f32 %v1599_v63, %v629_v17  ;;  %v683_v31 = vmax.f32 %v651_v44, 0.0 }
 0x12c   : > { %1117 = vmatpush3.msra.mxu1 %v693_v40  ;;  %v649_v40 = vadd.f32 %v1599_v63, %v613_v19 }
 0x12d   : > { %1118 = vmatprep.subr.mxu1 %v708_v42  ;;  %v648_v42 = vadd.f32 %v1599_v63, %v612_v47  ;;  %v697_v43 = vmax.f32 %v665_v38, 0.0  ;;  %v813_v63 = vld [vmem:[%s1870_s4 + $0x70] sm:$0xff] }
 0x12e   : > { %1119 = vmatpush3.msra.mxu1 %v692_v54  ;;  %v681_v29 = vmax.f32 %v649_v40, 0.0  ;;  %v814_v54 = vld [vmem:[%s1870_s4 + $0x78] sm:$0xff] }
 0x12f   : > { %1120 = vmatprep.subr.mxu1 %v707_v56  ;;  %v680_v52 = vmax.f32 %v648_v42, 0.0  ;;  %v810_v56 = vld [vmem:[%s1870_s4 + $0x58] sm:$0xff] }
 0x130   : > { %1121 = vmatpush3.msra.mxu1 %v691_v59  ;;  %v807_v59 = vld [vmem:[%s1870_s4 + $0x40] sm:$0xff] }
 0x131   : > { %1122 = vmatprep.subr.mxu1 %v706_v61  ;;  %v804_v61 = vld [vmem:[%s1870_s4 + $0x28] sm:$0xff] }
 0x132   : > { %1123 = vmatpush3.msra.mxu1 %v690_v62  ;;  %v801_v62 = vld [vmem:[%s1870_s4 + $0x10] sm:$0xff] }
 0x133   : > { %1124 = vmatprep.subr.mxu1 %v705_v2  ;;  %v904_v2 = vld [vmem:[%s1871_s5 + $0x70] sm:$0xff] }
 0x134   : > { %1125 = vmatpush3.msra.mxu1 %v689_v4  ;;  %1259 = vmatpush3.msra.mxu0 %v904_v2  ;;  %v901_v4 = vld [vmem:[%s1871_s5 + $0x58] sm:$0xff] }
 0x135   : > { %1126 = vmatprep.subr.mxu1 %v704_v6  ;;  %1260 = vmatprep.subr.mxu0 %v1414_v27  ;;  %v898_v6 = vld [vmem:[%s1871_s5 + $0x40] sm:$0xff] }
 0x136   : > { %1127 = vmatpush3.msra.mxu1 %v688_v8  ;;  %1261 = vmatpush3.msra.mxu0 %v903_v48  ;;  %v895_v8 = vld [vmem:[%s1871_s5 + $0x28] sm:$0xff] }
 0x137   : > { %1128 = vmatprep.subr.mxu1 %v703_v35  ;;  %1262 = vmatprep.subr.mxu0 %v1414_v27  ;;  %v893_v35 = vld [vmem:[%s1871_s5 + $0x18] sm:$0xff] }
 0x138   : > { %1129 = vmatpush3.msra.mxu1 %v687_v49  ;;  %1263 = vmatpush3.msra.mxu0 %v902_v3 }
 0x139   : > { %1130 = vmatprep.subr.mxu1 %v702_v33  ;;  %1264 = vmatprep.subr.mxu0 %v1414_v27 }
 0x13a   : > { %1131 = vmatpush3.msra.mxu1 %v686_v15  ;;  %1265 = vmatpush3.msra.mxu0 %v901_v4 }
 0x13b   : > { %1132 = vmatprep.subr.mxu1 %v701_v18  ;;  %1266 = vmatprep.subr.mxu0 %v1414_v27  ;;  %v886_v18 = vld [vmem:[%s1869_s3 + $0x5] sm:$0x1] }
 0x13c   : > { %1133 = vmatpush3.msra.mxu1 %v685_v20  ;;  %1267 = vmatpush3.msra.mxu0 %v900_v32 }
 0x13d   : > { %1134 = vmatprep.subr.mxu1 %v700_v22  ;;  %1268 = vmatprep.subr.mxu0 %v1414_v27 }
 0x13e   : > { %1135 = vmatpush3.msra.mxu1 %v684_v24  ;;  %1269 = vmatpush3.msra.mxu0 %v899_v5 }
 0x13f   : > { %1136 = vmatprep.subr.mxu1 %v699_v25  ;;  %1270 = vmatprep.subr.mxu0 %v1414_v27 }
 0x140   : > { %1137 = vmatpush3.msra.mxu1 %v683_v31  ;;  %1271 = vmatpush3.msra.mxu0 %v898_v6 }
 0x141   : > { %1138 = vmatprep.subr.mxu1 %v698_v41  ;;  %1272 = vmatprep.subr.mxu0 %v1414_v27 }
 0x142   : > { %1139 = vmatpush3.msra.mxu1 %v682_v36  ;;  %1273 = vmatpush3.msra.mxu0 %v897_v7 }
 0x143   : > { %1140 = vmatprep.subr.mxu1 %v697_v43  ;;  %1274 = vmatprep.subr.mxu0 %v1414_v27 }
 0x144   : > { %1141 = vmatpush3.msra.mxu1 %v681_v29  ;;  %1275 = vmatpush3.msra.mxu0 %v896_v51 }
 0x145   : > { %1142 = vmatprep.subr.mxu1 %v696_v57  ;;  %1276 = vmatprep.subr.mxu0 %v1414_v27 }
 0x146   : > { %1143 = vmatpush3.msra.mxu1 %v680_v52  ;;  %1277 = vmatpush3.msra.mxu0 %v895_v8 }
 0x147   : > { %789 = vmatmul.mubr.f32.vlgmr.msra.gmra.mxu1 %v1553_v26  ;;  %1221 = vmatprep.subr.mxu1 %v1414_v27  ;;  %v811_v26 = vld [vmem:[%s1870_s4 + $0x60] sm:$0xff] }
 0x148   : > { %1222 = vmatpush3.msra.mxu1 %v814_v54  ;;  %1253 = vmatprep.mubr.msk.f32.mxu1 %vm1415_vm1, %v1414_v27 }
 0x149   : > { %1223 = vmatprep.subr.mxu1 %v1414_v27  ;;  %1278 = vmatprep.subr.mxu0 %v1414_v27 }
 0x14a   : > { %1224 = vmatpush3.msra.mxu1 %v813_v63  ;;  %1279 = vmatpush3.msra.mxu0 %v894_v9 }
 0x14b   : > { %1225 = vmatprep.subr.mxu1 %v1414_v27  ;;  %1280 = vmatprep.subr.mxu0 %v1414_v27 }
 0x14c   : > { %1226 = vmatpush3.msra.mxu1 %v812_v55  ;;  %1281 = vmatpush3.msra.mxu0 %v893_v35 }
 0x14d   : > { %1227 = vmatprep.subr.mxu1 %v1414_v27  ;;  %1282 = vmatprep.subr.mxu0 %v1414_v27 }
 0x14e   : > { %1228 = vmatpush3.msra.mxu1 %v811_v26  ;;  %1283 = vmatpush3.msra.mxu0 %v892_v10 }
 0x14f   : > { %1229 = vmatprep.subr.mxu1 %v1414_v27  ;;  %1284 = vmatprep.subr.mxu0 %v1414_v27 }
 0x150   : > { %1230 = vmatpush3.msra.mxu1 %v810_v56  ;;  %1285 = vmatpush3.msra.mxu0 %v891_v11 }
 0x151   : > { %1231 = vmatprep.subr.mxu1 %v1414_v27  ;;  %1286 = vmatprep.subr.mxu0 %v1414_v27 }
 0x152   : > { %1232 = vmatpush3.msra.mxu1 %v809_v39 }
 0x153   : > { %1233 = vmatprep.subr.mxu1 %v1414_v27 }
 0x154   : > { %1234 = vmatpush3.msra.mxu1 %v808_v58 }
 0x155   : > { %1235 = vmatprep.subr.mxu1 %v1414_v27 }
 0x156   : > { %1236 = vmatpush3.msra.mxu1 %v807_v59 }
 0x157   : > { %1237 = vmatprep.subr.mxu1 %v1414_v27 }
 0x158   : > { %1238 = vmatpush3.msra.mxu1 %v806_v53 }
 0x159   : > { %1239 = vmatprep.subr.mxu1 %v1414_v27 }
 0x15a   : > { %1240 = vmatpush3.msra.mxu1 %v805_v60 }
 0x15b   : > { %1241 = vmatprep.subr.mxu1 %v1414_v27 }
 0x15c   : > { %1242 = vmatpush3.msra.mxu1 %v804_v61 }
 0x15d   : > { %1243 = vmatprep.subr.mxu1 %v1414_v27 }
 0x15e   : > { %1244 = vmatpush3.msra.mxu1 %v803_v37 }
 0x15f   : > { %1245 = vmatprep.subr.mxu1 %v1414_v27 }
 0x160   : > { %1246 = vmatpush3.msra.mxu1 %v802_v50 }
 0x161   : > { %1247 = vmatprep.subr.mxu1 %v1414_v27 }
 0x162   : > { %1248 = vmatpush3.msra.mxu1 %v801_v62 }
 0x163   : > { %1249 = vmatprep.subr.mxu1 %v1414_v27 }
 0x164   : > { %1250 = vmatpush3.msra.mxu1 %v800_v0 }
 0x165   : > { %1251 = vmatprep.subr.mxu1 %v1414_v27  ;;  %v890_v27 = vld [vmem:[%s1871_s5] sm:$0xff] }
 0x166   : > { %1252 = vmatpush3.msra.mxu1 %v799_v34  ;;  %1287 = vmatpush3.msra.mxu0 %v890_v27 }
 0x207   : > { %v1144_v49 = vpop.f32.mrf.mxu1 }
 0x209   : > { %v1145_v12 = vpop.f32.mrf.mxu1 }
 0x20a   : > { %v1146_v33 = vadd.f32 %v1145_v12, %v1144_v49 }
 0x20c   : > { %v796_v46 = vmul.f32 %v1146_v33, %v794_v13 }
 0x20e   : > { %v797_v15 = vadd.f32 %v796_v46, %v795_v14 }
 0x210   : > { %v798_v16 = vmax.f32 %v797_v15, 0.0 }
 0x212   : > { %1254 = vmatmul.mubr.f32.vlgmr.msra.gmra.mxu1 %v798_v16 }
 0x2d2   : > { %v881_v17 = vpop.f32.mrf.mxu1 }
 0x2d3   : > { %v887_v44 = vmul.f32 %v885_v30, %v881_v17 }
 0x2d4   : > { %v1255_v19 = vpop.f32.mrf.mxu1 }
 0x2d5   : > { %v888_v20 = vadd.f32 %v887_v44, %v886_v18 }
 0x2d7   : > { %v889_v28 = vmax.f32 %v888_v20, 0.0 }
 0x2d9   : > { %1289 = vmatmul.mubr.f32.vlgmr.msra.gmra.mxu0 %v889_v28 }
 0x399   : > { %v972_v21 = vpop.f32.mrf.mxu0 }
 0x39a   : > { %976 = vst [vmem:[%s244_s11] sm:$0x1] %v972_v21 }
 0x39b   : > { %v1290_v22 = vpop.f32.mrf.mxu0 }
 0x39c   : > { %1365 = shalt.err (!%p1362_p3)
}
 0x39d   : > { %s1366_s26 = scalar_lea.hbm %s1827_s16, 16  ;;  %s1370_s9 = scalar_lea.hbm %s1872_s6, 32 }
 0x39e   : > { %p1367_p4 = scmp.ne.s32.totalorder %s1827_s16, %s1366_s26  ;;  %p1371_p9 = scmp.lt.s32.totalorder %s1827_s16, %s1872_s6 }
 0x39f   : > { %p1372_p10 = scmp.lt.s32.totalorder %s1370_s9, %s1366_s26 }
 0x3a0   : > { %p1368_p7 = pnand %p1367_p4, %p1490_p5 }
 0x3a1   : > { %p1373_p11 = por %p1372_p10, %p1371_p9 }
 0x3a2   : > { %p1369_p8 = pneg %p1368_p7 }
 0x3a4   : > { %p1374_p12 = pnand %p1373_p11, %p1369_p8 }
 0x3a6   : > { %1377 = shalt.err (!%p1374_p12)
}
 0x3a7   : > { %1291 = dma.vmem_to_hbm [thread:$0]  (%p1490_p5), %s1822_s12, 16, %s1827_s16, %s978_s17  }
 0x3a8 PF: > { %p1297_p13 = scmp.ge.s32.totalorder %s1412_s24, 2  ;;  %s1002_s13 = sand.u32 1, %s1400_s21  }
 0x3a9   : > { %s1003_s14 = scalar_lea.sflag [#allocation3], %s1002_s13 }
 0x3aa   : > { %p1294_p0 = pnand %p1297_p13, %p1494_p6 }
 0x3ac   : > { %p1295_p1 = pneg %p1294_p0 }
 0x3ae   : > { %1395 = dma.done.wait (%p1295_p1), %s1003_s14, 16  }
 0x3af   : > { %1397 = vsyncadd (%p1295_p1), %s1003_s14, 4294967280  ;;  %p16_p2 = scmp.ge.s32.totalorder %s1477_s27, 4   ;;  %s1875_s21 = smov %s1404_s22 }
 0x3b0   : > { %s1876_s22 = smov %s1408_s23  ;;  %s1877_s23 = smov %s1488_s30 }
 0x3b1   : > { %s1878_s24 = smov %s1477_s27  ;;  %18 = sbr.rel (!%p16_p2) target bundleno = 3 (0x3), region = 79 }
 0x3b6   :  { %1007 = vsyncpa [#allocation3], 1 }
 0x3b7   :  { %1009 = vsyncpa [#allocation3 + $0x1], 1 }

</bundles_post_ra>
